<compile_context>
chip_gen: v7x
topology: tpu7x:2x2x1
jax: 0.10.0
libtpu: 0.0.40
codegen_flags: <defaults>
</compile_context>

<pallas_src>
import math

import jax
import jax.numpy as jnp
from jax.experimental import pallas as pl
from jax.experimental.pallas import tpu as pltpu


def _sdpa_kernel(q_ref, k_ref, v_ref, mask_ref, ctx_ref, attn_ref):
    # Per grid step:
    #   q_ref    (HB, TQ, Dk)  native dtype
    #   k_ref    (HB, Lk, Dk)  native dtype (resident across q tiles)
    #   v_ref    (HB, Lk, Dv)  native dtype (resident across q tiles)
    #   mask_ref (HB, TQ, Lk)  int8, nonzero => masked
    #   ctx_ref  (HB, TQ, Dv)
    #   attn_ref (HB, TQ, Lk)
    q = q_ref[...]
    k = k_ref[...]
    v = v_ref[...]

    # Fold 1/sqrt(d_k) into Q before the matmul (cheaper than scaling (TQ, Lk) scores).
    d_k = q.shape[-1]
    q = q * jnp.asarray(1.0 / math.sqrt(d_k), dtype=q.dtype)

    # scores = Q @ K^T: contract last dims of both operands (no explicit transpose),
    # native-dtype MXU inputs, f32 accumulation.
    scores = jnp.einsum("hqd,hkd->hqk", q, k,
                        preferred_element_type=jnp.float32)

    # masked_fill_(attn_mask, -1e9)
    scores = jnp.where(mask_ref[...] != 0, jnp.float32(-1.0e9), scores)

    # Numerically-stable softmax along Lk, kept in f32 (matches nn.Softmax(dim=-1)).
    m = jnp.max(scores, axis=-1, keepdims=True)
    e = jnp.exp(scores - m)
    denom = jnp.sum(e, axis=-1, keepdims=True)
    attn = e * pl.reciprocal(denom, approx=True)

    # context = attn @ V, probabilities cast to V's dtype for the MXU.
    ctx = jnp.einsum("hqk,hkd->hqd", attn.astype(v.dtype), v,
                     preferred_element_type=jnp.float32)

    ctx_ref[...] = ctx.astype(ctx_ref.dtype)
    attn_ref[...] = attn.astype(attn_ref.dtype)


def _largest_divisor_leq(n, cap):
    cap = int(max(1, min(n, cap)))
    for d in range(cap, 0, -1):
        if n % d == 0:
            return d
    return 1


def _pick_q_tile(lq):
    # Second-to-last block dim must be a multiple of 8 or span the full axis.
    if lq <= 512:
        return lq
    for tq in (512, 256, 128):
        if lq % tq == 0:
            return tq
    return lq  # fall back to full extent (always legal)


def scaled_dot_product_attention(Q, K, V, attn_mask):
    """Pallas equivalent of ScaledDotProductAttention.forward.

    Q:  [B, H, Lq, Dk]
    K:  [B, H, Lk, Dk]
    V:  [B, H, Lk, Dv]
    attn_mask: [B, H, Lq, Lk], True/nonzero = mask out
    returns (context [B,H,Lq,Dv], attn [B,H,Lq,Lk])
    """
    B, H, Lq, Dk = Q.shape
    Lk = K.shape[2]
    Dv = V.shape[3]
    BH = B * H

    q = Q.reshape(BH, Lq, Dk)
    k = K.reshape(BH, Lk, Dk)
    v = V.reshape(BH, Lk, Dv)
    mask = attn_mask.reshape(BH, Lq, Lk).astype(jnp.int8)  # 4x smaller HBM stream vs int32

    out_dtype = Q.dtype
    attn_dtype = Q.dtype  # softmax dtype follows scores dtype, as in torch

    TQ = _pick_q_tile(Lq)
    n_q = Lq // TQ

    # Heads batched per grid step: keep a single step's blocks (+ f32 scores temp)
    # under a budget that double-buffers comfortably inside v7x's 64 MiB VMEM.
    isz = jnp.dtype(Q.dtype).itemsize
    attn_isz = jnp.dtype(attn_dtype).itemsize
    per_head = ((TQ * Dk + Lk * Dk + Lk * Dv + TQ * Dv) * isz
                + TQ * Lk * (1 + attn_isz)   # int8 mask block + attn output block
                + TQ * Lk * 4)               # f32 scores/probabilities temp
    step_budget = 8 * 1024 * 1024
    hb_cap = max(1, step_budget // max(per_head, 1))
    if BH >= 2:
        hb_cap = min(hb_cap, BH // 2)  # keep >= 2 parallel grid steps (v7x has 2 TCs)
    HB = _largest_divisor_leq(BH, hb_cap)
    n_bh = BH // HB

    step_bytes = HB * per_head
    vmem_limit = int(min(48 * 1024 * 1024,
                         max(2 * step_bytes + (4 << 20), 16 * 1024 * 1024)))

    grid = (n_bh, n_q)  # q-tile axis innermost so resident K/V blocks are not re-DMA'd
    in_specs = [
        pl.BlockSpec((HB, TQ, Dk), lambda bh, qi: (bh, qi, 0)),
        pl.BlockSpec((HB, Lk, Dk), lambda bh, qi: (bh, 0, 0)),  # ignores qi -> resident
        pl.BlockSpec((HB, Lk, Dv), lambda bh, qi: (bh, 0, 0)),  # ignores qi -> resident
        pl.BlockSpec((HB, TQ, Lk), lambda bh, qi: (bh, qi, 0)),
    ]
    out_specs = [
        pl.BlockSpec((HB, TQ, Dv), lambda bh, qi: (bh, qi, 0)),
        pl.BlockSpec((HB, TQ, Lk), lambda bh, qi: (bh, qi, 0)),
    ]
    out_shape = (
        jax.ShapeDtypeStruct((BH, Lq, Dv), out_dtype),
        jax.ShapeDtypeStruct((BH, Lq, Lk), attn_dtype),
    )

    flops = 2 * BH * Lq * Lk * (Dk + Dv)
    bytes_accessed = ((q.size + k.size + v.size) * isz + mask.size
                      + BH * Lq * Dv * isz + BH * Lq * Lk * attn_isz)
    cost = pl.CostEstimate(flops=flops,
                           transcendentals=BH * Lq * Lk,
                           bytes_accessed=bytes_accessed)

    ctx, attn = pl.pallas_call(
        _sdpa_kernel,
        out_shape=out_shape,
        grid_spec=pltpu.PrefetchScalarGridSpec(
            num_scalar_prefetch=0,
            grid=grid,
            in_specs=in_specs,
            out_specs=out_specs,
        ),
        compiler_params=pltpu.CompilerParams(
            dimension_semantics=("parallel", "arbitrary"),
            vmem_limit_bytes=vmem_limit,
        ),
        cost_estimate=cost,
    )(q, k, v, mask)

    return ctx.reshape(B, H, Lq, Dv), attn.reshape(B, H, Lq, Lk)


def _reference(Q, K, V, attn_mask):
    d_k = Q.shape[-1]
    scores = jnp.einsum("bhqd,bhkd->bhqk", Q.astype(jnp.float32),
                        K.astype(jnp.float32)) / jnp.sqrt(jnp.float32(d_k))
    scores = jnp.where(attn_mask, -1.0e9, scores)
    attn = jax.nn.softmax(scores, axis=-1)
    ctx = jnp.einsum("bhqk,bhkd->bhqd", attn, V.astype(jnp.float32))
    return ctx.astype(Q.dtype), attn.astype(Q.dtype)


if __name__ == "__main__":
    key = jax.random.PRNGKey(0)
    kq, kk, kv = jax.random.split(key, 3)

    B, H, Lq, Lk, Dk, Dv = 2, 4, 8, 8, 32, 32
    Q = jax.random.normal(kq, (B, H, Lq, Dk), dtype=jnp.float32)
    K = jax.random.normal(kk, (B, H, Lk, Dk), dtype=jnp.float32)
    V = jax.random.normal(kv, (B, H, Lk, Dv), dtype=jnp.float32)
    # causal-style boolean mask (True = masked), broadcast to [B,H,Lq,Lk]
    causal = jnp.triu(jnp.ones((Lq, Lk), dtype=jnp.bool_), k=1)
    attn_mask = jnp.broadcast_to(causal, (B, H, Lq, Lk))

    ctx, attn = scaled_dot_product_attention(Q, K, V, attn_mask)
    jax.block_until_ready((ctx, attn))

    ctx_ref, attn_ref = _reference(Q, K, V, attn_mask)
    # Tolerances relaxed vs the f32-exact version: native-dtype MXU matmuls and the
    # approximate EUP reciprocal in the softmax introduce small (<<1e-2) deviations.
    assert jnp.allclose(ctx, ctx_ref, atol=1e-2, rtol=1e-2)
    assert jnp.allclose(attn, attn_ref, atol=1e-2, rtol=1e-2)

    print("KERNEL_OK")
</pallas_src>

<mosaic_0001>
module attributes {stable_mosaic.version = 11 : i64} {
  func.func @_sdpa_kernel(%arg0: i32, %arg1: i32, %arg2: memref<4x8x32xf32, #tpu.memory_space<vmem>>, %arg3: memref<4x8x32xf32, #tpu.memory_space<vmem>>, %arg4: memref<4x8x32xf32, #tpu.memory_space<vmem>>, %arg5: memref<4x8x8xi8, #tpu.memory_space<vmem>>, %arg6: memref<4x8x32xf32, #tpu.memory_space<vmem>>, %arg7: memref<4x8x8xf32, #tpu.memory_space<vmem>>) attributes {dimension_semantics = [#tpu.dimension_semantics<parallel>, #tpu.dimension_semantics<arbitrary>], iteration_bounds = array<i64: 2, 1>, scalar_prefetch = 0 : i64, scratch_operands = 0 : i64, tpu.core_type = #tpu.core_type<tc>, window_params = [{transform_indices = @transform_0, window_bounds = array<i64: 4, 8, 32>}, {transform_indices = @transform_1, window_bounds = array<i64: 4, 8, 32>}, {transform_indices = @transform_2, window_bounds = array<i64: 4, 8, 32>}, {transform_indices = @transform_3, window_bounds = array<i64: 4, 8, 8>}, {transform_indices = @transform_4, window_bounds = array<i64: 4, 8, 32>}, {transform_indices = @transform_5, window_bounds = array<i64: 4, 8, 8>}]} {
    %c0 = arith.constant 0 : index
    %c0_0 = arith.constant 0 : index
    %c0_1 = arith.constant 0 : index
    %0 = vector.load %arg2[%c0, %c0_0, %c0_1] : memref<4x8x32xf32, #tpu.memory_space<vmem>>, vector<4x8x32xf32>
    %c0_2 = arith.constant 0 : index
    %c0_3 = arith.constant 0 : index
    %c0_4 = arith.constant 0 : index
    %1 = vector.load %arg3[%c0_2, %c0_3, %c0_4] : memref<4x8x32xf32, #tpu.memory_space<vmem>>, vector<4x8x32xf32>
    %c0_5 = arith.constant 0 : index
    %c0_6 = arith.constant 0 : index
    %c0_7 = arith.constant 0 : index
    %2 = vector.load %arg4[%c0_5, %c0_6, %c0_7] : memref<4x8x32xf32, #tpu.memory_space<vmem>>, vector<4x8x32xf32>
    %cst = arith.constant 0.176776692 : f32
    %3 = vector.broadcast %cst : f32 to vector<4x8x32xf32>
    %4 = arith.mulf %0, %3 : vector<4x8x32xf32>
    "tpu.trace_start"() <{level = 10 : i32, message = "hqd,hkd->hqk"}> : () -> ()
    %cst_8 = arith.constant dense<0.000000e+00> : vector<4x8x8xf32>
    %5 = tpu.matmul %4, %1, %cst_8 {dimension_numbers = #tpu.dot_dimension_numbers<[2], [2], [1], [1], [0, 0, 0, 1, 1, 1], [0], [0]>} : vector<4x8x32xf32>, vector<4x8x32xf32>, vector<4x8x8xf32> -> vector<4x8x8xf32>
    "tpu.trace_stop"() : () -> ()
    %c0_9 = arith.constant 0 : index
    %c0_10 = arith.constant 0 : index
    %c0_11 = arith.constant 0 : index
    %6 = vector.load %arg5[%c0_9, %c0_10, %c0_11] : memref<4x8x8xi8, #tpu.memory_space<vmem>>, vector<4x8x8xi8>
    %c0_i8 = arith.constant 0 : i8
    %7 = vector.broadcast %c0_i8 : i8 to vector<4x8x8xi8>
    %8 = arith.cmpi ne, %6, %7 : vector<4x8x8xi8>
    %cst_12 = arith.constant -1.000000e+09 : f32
    %9 = vector.broadcast %cst_12 : f32 to vector<4x8x8xf32>
    %10 = arith.select %8, %9, %5 : vector<4x8x8xi1>, vector<4x8x8xf32>
    %cst_13 = arith.constant dense<0xFF800000> : vector<4x8xf32>
    %11 = vector.multi_reduction <maximumf>, %10, %cst_13 [2] : vector<4x8x8xf32> to vector<4x8xf32>
    %12 = vector.shape_cast %11 : vector<4x8xf32> to vector<4x8x1xf32>
    %13 = vector.broadcast %12 : vector<4x8x1xf32> to vector<4x8x8xf32>
    %14 = arith.subf %10, %13 : vector<4x8x8xf32>
    %15 = math.exp %14 : vector<4x8x8xf32>
    %cst_14 = arith.constant dense<0.000000e+00> : vector<4x8xf32>
    %16 = vector.multi_reduction <add>, %15, %cst_14 [2] : vector<4x8x8xf32> to vector<4x8xf32>
    %17 = vector.shape_cast %16 : vector<4x8xf32> to vector<4x8x1xf32>
    %18 = tpu.reciprocal %17 {approx = true} : vector<4x8x1xf32> -> vector<4x8x1xf32>
    %19 = vector.broadcast %18 : vector<4x8x1xf32> to vector<4x8x8xf32>
    %20 = arith.mulf %15, %19 : vector<4x8x8xf32>
    "tpu.trace_start"() <{level = 10 : i32, message = "hqk,hkd->hqd"}> : () -> ()
    %cst_15 = arith.constant dense<0.000000e+00> : vector<4x8x32xf32>
    %21 = tpu.matmul %20, %2, %cst_15 {dimension_numbers = #tpu.dot_dimension_numbers<[2], [1], [1], [2], [0, 0, 0, 1, 1, 2], [0], [0]>} : vector<4x8x8xf32>, vector<4x8x32xf32>, vector<4x8x32xf32> -> vector<4x8x32xf32>
    "tpu.trace_stop"() : () -> ()
    %c0_16 = arith.constant 0 : index
    %c0_17 = arith.constant 0 : index
    %c0_18 = arith.constant 0 : index
    %22 = vector.load %arg6[%c0_16, %c0_17, %c0_18] : memref<4x8x32xf32, #tpu.memory_space<vmem>>, vector<4x8x32xf32>
    tpu.vector_store %arg6[%c0_16, %c0_17, %c0_18], %21 {strides = array<i32>} : memref<4x8x32xf32, #tpu.memory_space<vmem>>, vector<4x8x32xf32>,
    %c0_19 = arith.constant 0 : index
    %c0_20 = arith.constant 0 : index
    %c0_21 = arith.constant 0 : index
    %23 = vector.load %arg7[%c0_19, %c0_20, %c0_21] : memref<4x8x8xf32, #tpu.memory_space<vmem>>, vector<4x8x8xf32>
    tpu.vector_store %arg7[%c0_19, %c0_20, %c0_21], %20 {strides = array<i32>} : memref<4x8x8xf32, #tpu.memory_space<vmem>>, vector<4x8x8xf32>,
    return
  }
  func.func @transform_0(%arg0: i32, %arg1: i32) -> (i32, i32, i32) {
    %c0_i32 = arith.constant 0 : i32
    %c0_i32_0 = arith.constant 0 : i32
    return %arg0, %arg1, %c0_i32 : i32, i32, i32
  }
  func.func @transform_1(%arg0: i32, %arg1: i32) -> (i32, i32, i32) {
    %c0_i32 = arith.constant 0 : i32
    %c0_i32_0 = arith.constant 0 : i32
    %c0_i32_1 = arith.constant 0 : i32
    return %arg0, %c0_i32, %c0_i32_0 : i32, i32, i32
  }
  func.func @transform_2(%arg0: i32, %arg1: i32) -> (i32, i32, i32) {
    %c0_i32 = arith.constant 0 : i32
    %c0_i32_0 = arith.constant 0 : i32
    %c0_i32_1 = arith.constant 0 : i32
    return %arg0, %c0_i32, %c0_i32_0 : i32, i32, i32
  }
  func.func @transform_3(%arg0: i32, %arg1: i32) -> (i32, i32, i32) {
    %c0_i32 = arith.constant 0 : i32
    %c0_i32_0 = arith.constant 0 : i32
    return %arg0, %arg1, %c0_i32 : i32, i32, i32
  }
  func.func @transform_4(%arg0: i32, %arg1: i32) -> (i32, i32, i32) {
    %c0_i32 = arith.constant 0 : i32
    %c0_i32_0 = arith.constant 0 : i32
    return %arg0, %arg1, %c0_i32 : i32, i32, i32
  }
  func.func @transform_5(%arg0: i32, %arg1: i32) -> (i32, i32, i32) {
    %c0_i32 = arith.constant 0 : i32
    %c0_i32_0 = arith.constant 0 : i32
    return %arg0, %arg1, %c0_i32 : i32, i32, i32
  }
}

</mosaic_0001>

<bundles_post_ra>
// kernel: tpu_custom_call.1
= control target key start
LH: loop header
LB: loop body
LE: loop exit
PB: predicated region body
PF: predicated region fallthrough
CT: control target
= control target key end

     0   :  { %s2252_s0 = inlined_call_operand.hbm [shape: f32[8,8,32], index: 0, kind: input, shape index: {}]   ;;  %s2253_s1 = inlined_call_operand.hbm [shape: f32[8,8,32], index: 1, kind: input, shape index: {}]   ;;  %s2254_s2 = inlined_call_operand.hbm [shape: f32[8,8,32], index: 2, kind: input, shape index: {}]   ;;  %s2255_s3 = inlined_call_operand.hbm [shape: s8[8,8,8], index: 3, kind: input, shape index: {}]   ;;  %s2256_s4 = inlined_call_operand.hbm [shape: f32[8,8,32], index: 4, kind: output, shape index: {0}]   ;;  %s2257_s5 = inlined_call_operand.hbm [shape: f32[8,8,8], index: 5, kind: output, shape index: {1}]  }
   0x1   :  { %2270 = sst [smem:[#allocation24_spill]] %s2252_s0 }
   0x2   :  { %2271 = sst [smem:[#allocation25_spill]] %s2253_s1 }
   0x3   :  { %11 = vsyncpa [#allocation3], 0 }
   0x4   :  { %13 = vsyncpa [#allocation3 + $0x1], 0 }
   0x5   :  { %14 = vsyncpa [#allocation6], 0 }
   0x6   :  { %16 = vsyncpa [#allocation6 + $0x1], 0 }
   0x7   :  { %17 = vsyncpa [#allocation9], 0 }
   0x8   :  { %19 = vsyncpa [#allocation9 + $0x1], 0 }
   0x9   :  { %20 = vsyncpa [#allocation4], 0 }
   0xa   :  { %22 = vsyncpa [#allocation4 + $0x1], 0 }
   0xb   :  { %23 = vsyncpa [#allocation12], 0 }
   0xc   :  { %25 = vsyncpa [#allocation12 + $0x1], 0  ;;  %s1816_s18 = smov 0   ;;  %s1818_s19 = smov 0  }
   0xd   :  { %s1820_s20 = smov 0   ;;  %s1822_s21 = smov 0  }
   0xe   :  { %s1824_s22 = smov 0   ;;  %s1826_s23 = smov 0  }
   0xf LB: > { %2272 = sst [smem:[#allocation18_spill]] %s1749_s18  ;;  %s1847_s24 = sadd.s32 4294967295, %s1769_s23   ;;  %s1769_s23 = sphi %s1826_s23, %s31_s23   ;;  %s1765_s22 = sphi %s1824_s22, %s2305_s22   ;;  %s1761_s21 = sphi %s1822_s21, %s2304_s21   ;;  %s1757_s20 = sphi %s1820_s20, %s2300_s20   ;;  %s1753_s19 = sphi %s1818_s19, %s2303_s19   ;;  %s1749_s18 = sphi %s1816_s18, %s2302_s18  }
  0x10   : > { %2273 = sst [smem:[#allocation19_spill]] %s1757_s20  ;;  %s1316_s25 = sadd.s32 4294967294, %s1769_s23  }
  0x11   : > { %2274 = sst [smem:[#allocation20_spill]] %s1769_s23  ;;  %s43_s26 = sadd.s32 1, %s1765_s22 }
  0x12   : > { %s52_s27 = sadd.s32 1, %s1757_s20  ;;  %p45_p0 = scmp.ge.s32.totalorder %s43_s26, 2 }
  0x13   : > { %p59_p1 = scmp.ne.s32.totalorder %s1757_s20, %s1753_s19  ;;  %p60_p2 = scmp.eq.s32.totalorder %s1769_s23, 0 }
  0x14   : > { %p65_p3 = scmp.ne.s32.totalorder %s1753_s19, %s1749_s18  ;;  %s2307_s26 = smov (%p45_p0, %s43_s26), 0 }
  0x15   : > { %2275 = sst [smem:[#allocation21_spill]] %s2307_s26  ;;  %p1859_p4 = por %p60_p2, %p59_p1 }
  0x16   : > { %p66_p5 = scmp.eq.s32.totalorder %s1847_s24, 0  ;;  %s47_s29 = ssub.s32 %s1765_s22, %s2307_s26 }
  0x17   : > { %p171_p6 = scmp.eq.s32.totalorder %s1847_s24, 1  ;;  %p50_p7 = scmp.eq.s32.totalorder %s47_s29, 0 }
  0x18   : > { %p1867_p8 = por %p66_p5, %p65_p3  ;;  %p177_p10 = scmp.eq.s32.totalorder %s1316_s25, 1 }
  0x19   : > { %p1871_p9 = por %p171_p6, %p59_p1  ;;  %p1452_p13 = scmp.lt.s32.totalorder %s1769_s23, 2 }
  0x1a   : > { %s2277_s30 = scalar_select %p1867_p8, 1, 0 }
  0x1b   : > { %s2278_s6 = scalar_select %p1871_p9, 1, 0 }
  0x1c   : > { %s1876_s7 = scalar_select %p50_p7, %s1757_s20, %s52_s27  }
  0x1d   : > { %p1878_p11 = por %p177_p10, %p65_p3  ;;  %s1885_s9 = sand.u32 1, %s1757_s20  }
  0x1e   : > { %2279 = sst [smem:[#allocation22_spill]] %s1876_s7  ;;  %s1888_s10 = sshll.u32 %s1885_s9, 5 }
  0x1f   : > { %s2280_s8 = scalar_select %p1878_p11, 1, 0 }
  0x20   : > { %s1891_s11 = sshll.u32 %s1765_s22, 9  ;;  %p1895_p0 = pnand %p1452_p13, %p1859_p4 }
  0x21   : > { %2281 = sst [smem:[#allocation23_spill]] %s2280_s8  ;;  %s247_s13 = sand.u32 1, %s1769_s23  }
  0x22   : > { %s2283_s1 = sld [smem:[#allocation25_spill]]  ;;  %s251_s17 = scalar_lea.vmem [#allocation5], %s1888_s10 }
  0x23   : > { %s258_s25 = sshll.u32 %s251_s17, 4  ;;  %s1911_s27 = scalar_lea.sflag [#allocation6], %s247_s13  ;;  %s1908_s25 = int_to_ptr.vmem [resolvable:$true] %s258_s25 }
  0x24   : > { %p1917_p4 = pneg %p1895_p0 }
  0x28   : > { %s1904_s16 = scalar_lea.hbm %s2283_s1, %s1891_s11  ;;  %s1532_s17 = scalar_lea.hbm %s2283_s1, 1024 }
  0x29   : > { %s1527_s28 = scalar_lea.hbm %s1904_s16, 512  ;;  %p1533_p7 = scmp.lt.u32.totalorder %s1904_s16, %s2283_s1 }
  0x2a   : > { %p1528_p3 = scmp.ne.s32.totalorder %s1904_s16, %s1527_s28  ;;  %p1534_p10 = scmp.lt.u32.totalorder %s1532_s17, %s1527_s28 }
  0x2b   : > { %p1536_p12 = scmp.lt.u32.totalorder %s1527_s28, %s1904_s16 }
  0x2c   : > { %p1530_p5 = pnand %p1917_p4, %p1528_p3  ;;  %p1535_p13 = por %p1534_p10, %p1533_p7 }
  0x2e   : > { %p1531_p6 = pneg %p1530_p5  ;;  %p1537_p1 = por %p1536_p12, %p1535_p13 }
  0x30   : > { %p1538_p2 = pnand %p1537_p1, %p1531_p6 }
  0x32   : > { %1541 = shalt.err (!%p1538_p2)
}
  0x33   : > { %s1542_s13 = scalar_lea.vmem %s1908_s25, 512  ;;  %s1771_s14 = smov [#allocation5]  }
  0x34   : > { %p1543_p3 = scmp.ne.s32.totalorder %s1908_s25, %s1542_s13  ;;  %s1547_s15 = sshll.u32 %s1771_s14, 4  ;;  %s1548_s15 = int_to_ptr.vmem [resolvable:$false] %s1547_s15 }
  0x35   : > { %s1549_s26 = scalar_lea.vmem %s1548_s15, 1024  ;;  %p1550_p9 = scmp.lt.s32.totalorder %s1908_s25, %s1548_s15 }
  0x36   : > { %p1545_p5 = pnand %p1543_p3, %p1917_p4  ;;  %p1551_p8 = scmp.lt.s32.totalorder %s1549_s26, %s1542_s13 }
  0x38   : > { %p1546_p11 = pneg %p1545_p5  ;;  %p1552_p7 = por %p1551_p8, %p1550_p9 }
  0x3a   : > { %p1553_p10 = pnand %p1552_p7, %p1546_p11 }
  0x3c   : > { %1556 = shalt.err (!%p1553_p10)
}
  0x3d   : > { %s2261_s7 = smov 128   ;;  %s2263_s28 = smov 8  }
  0x3e   : > { %1438 = dma.hbm_to_vmem [thread:$0]  (!%p1895_p0), %s1904_s16, 512, %s1908_s25, %s1911_s27, %s2261_s7, %s2261_s7, %s2263_s28  }
  0x3f   : > { %p2285_p8 = scmp.lt.s32.totalorder %s1769_s23, 3  ;;  %p2286_p9 = scmp.ge.s32.totalorder %s1769_s23, 1 }
  0x40   : > { %s2288_s0 = sld [smem:[#allocation24_spill]]  ;;  %s229_s26 = scalar_lea.vmem [#allocation2], %s1888_s10 }
  0x41   : > { %p1948_p11 = pnand %p2286_p9, %p2285_p8  ;;  %s237_s1 = sshll.u32 %s229_s26, 4  ;;  %s1959_s1 = int_to_ptr.vmem [resolvable:$true] %s237_s1 }
  0x42   : > { %s1965_s7 = scalar_lea.hbm %s2254_s2, %s1891_s11  ;;  %s226_s28 = scalar_lea.sflag [#allocation3], %s1885_s9 }
  0x43   : > { %s2287_s17 = scalar_select %p1948_p11, 1, 0 }
  0x46   : > { %s1956_s15 = scalar_lea.hbm %s2288_s0, %s1891_s11  ;;  %s1562_s23 = scalar_lea.hbm %s2288_s0, 1024 }
  0x47   : > { %s1557_s20 = scalar_lea.hbm %s1956_s15, 512  ;;  %p1563_p6 = scmp.lt.u32.totalorder %s1956_s15, %s2288_s0 }
  0x48   : > { %p1558_p12 = scmp.ne.s32.totalorder %s1956_s15, %s1557_s20  ;;  %p1564_p13 = scmp.lt.u32.totalorder %s1562_s23, %s1557_s20 }
  0x49   : > { %p1566_p5 = scmp.lt.u32.totalorder %s1557_s20, %s1956_s15 }
  0x4a   : > { %p1560_p1 = pnand %p1558_p12, %p1917_p4  ;;  %p1565_p3 = por %p1564_p13, %p1563_p6 }
  0x4c   : > { %p1561_p2 = pneg %p1560_p1  ;;  %p1567_p7 = por %p1566_p5, %p1565_p3 }
  0x4e   : > { %p1568_p10 = pnand %p1567_p7, %p1561_p2 }
  0x50   : > { %1571 = shalt.err (!%p1568_p10)
}
  0x51   : > { %s1572_s11 = scalar_lea.vmem %s1959_s1, 512  ;;  %s1774_s26 = smov [#allocation2]  }
  0x52   : > { %p1573_p8 = scmp.ne.s32.totalorder %s1959_s1, %s1572_s11  ;;  %s1577_s16 = sshll.u32 %s1774_s26, 4  ;;  %s1578_s16 = int_to_ptr.vmem [resolvable:$false] %s1577_s16 }
  0x53   : > { %s1579_s18 = scalar_lea.vmem %s1578_s16, 1024  ;;  %p1580_p1 = scmp.lt.s32.totalorder %s1959_s1, %s1578_s16 }
  0x54   : > { %p1575_p9 = pnand %p1573_p8, %p1917_p4  ;;  %p1581_p11 = scmp.lt.s32.totalorder %s1579_s18, %s1572_s11 }
  0x56   : > { %p1576_p12 = pneg %p1575_p9  ;;  %p1582_p6 = por %p1581_p11, %p1580_p1 }
  0x58   : > { %p1583_p13 = pnand %p1582_p6, %p1576_p12 }
  0x5a   : > { %1586 = shalt.err (!%p1583_p13)
}
  0x5b   : > { %s2289_s20 = smov 8   ;;  %s2290_s23 = smov 128  }
  0x5c   : > { %1435 = dma.hbm_to_vmem [thread:$0]  (!%p1895_p0), %s1956_s15, 512, %s1959_s1, %s226_s28, %s2290_s23, %s2290_s23, %s2289_s20  }
  0x5d   : > { %s272_s8 = scalar_lea.vmem [#allocation7], %s1888_s10  ;;  %s1328_s13 = sshll.u32 %s1885_s9, 3 }
  0x5e   : > { %s279_s25 = sshll.u32 %s272_s8, 4  ;;  %s1587_s14 = scalar_lea.hbm %s1965_s7, 512  ;;  %s1995_s25 = int_to_ptr.vmem [resolvable:$true] %s279_s25 }
  0x5f   : > { %p1588_p11 = scmp.ne.s32.totalorder %s1965_s7, %s1587_s14  ;;  %s1592_s16 = scalar_lea.hbm %s2254_s2, 1024 }
  0x60   : > { %p1593_p5 = scmp.lt.u32.totalorder %s1965_s7, %s2254_s2  ;;  %p1594_p7 = scmp.lt.u32.totalorder %s1592_s16, %s1587_s14 }
  0x61   : > { %p1590_p2 = pnand %p1588_p11, %p1917_p4  ;;  %p1596_p8 = scmp.lt.u32.totalorder %s1587_s14, %s1965_s7 }
  0x62   : > { %p1595_p10 = por %p1594_p7, %p1593_p5 }
  0x63   : > { %p1591_p3 = pneg %p1590_p2 }
  0x64   : > { %p1597_p9 = por %p1596_p8, %p1595_p10 }
  0x66   : > { %p1598_p12 = pnand %p1597_p9, %p1591_p3 }
  0x68   : > { %1601 = shalt.err (!%p1598_p12)
}
  0x69   : > { %s1602_s1 = scalar_lea.vmem %s1995_s25, 512  ;;  %s1775_s10 = smov [#allocation7]  }
  0x6a   : > { %p1603_p1 = scmp.ne.s32.totalorder %s1995_s25, %s1602_s1  ;;  %s1607_s28 = sshll.u32 %s1775_s10, 4  ;;  %s1608_s28 = int_to_ptr.vmem [resolvable:$false] %s1607_s28 }
  0x6b   : > { %s1609_s0 = scalar_lea.vmem %s1608_s28, 1024  ;;  %p1610_p11 = scmp.lt.s32.totalorder %s1995_s25, %s1608_s28 }
  0x6c   : > { %p1605_p6 = pnand %p1603_p1, %p1917_p4  ;;  %p1611_p2 = scmp.lt.s32.totalorder %s1609_s0, %s1602_s1 }
  0x6e   : > { %p1606_p13 = pneg %p1605_p6  ;;  %p1612_p5 = por %p1611_p2, %p1610_p11 }
  0x70   : > { %p1613_p7 = pnand %p1612_p5, %p1606_p13 }
  0x72   : > { %1616 = shalt.err (!%p1613_p7)
}
  0x73   : > { %1441 = dma.hbm_to_vmem [thread:$0]  (!%p1895_p0), %s1965_s7, 512, %s1995_s25, %s1911_s27, %s2290_s23, %s2290_s23, %s2289_s20  }
  0x74   : > { %s1361_s15 = sshll.u32 %s1765_s22, 7  ;;  %s293_s26 = scalar_lea.vmem [#allocation8], %s1328_s13 }
  0x75   : > { %s2027_s11 = scalar_lea.hbm %s2255_s3, %s1361_s15  ;;  %s301_s16 = sshll.u32 %s293_s26, 4  ;;  %s2031_s16 = int_to_ptr.vmem [resolvable:$true] %s301_s16 }
  0x76   : > { %s290_s18 = scalar_lea.sflag [#allocation9], %s1885_s9  ;;  %s1617_s1 = scalar_lea.hbm %s2027_s11, 128 }
  0x77   : > { %p1618_p3 = scmp.ne.s32.totalorder %s2027_s11, %s1617_s1  ;;  %s1622_s20 = scalar_lea.hbm %s2255_s3, 256 }
  0x78   : > { %p1623_p9 = scmp.lt.u32.totalorder %s2027_s11, %s2255_s3  ;;  %p1624_p12 = scmp.lt.u32.totalorder %s1622_s20, %s1617_s1 }
  0x79   : > { %p1620_p10 = pnand %p1618_p3, %p1917_p4  ;;  %p1626_p6 = scmp.lt.u32.totalorder %s1617_s1, %s2027_s11 }
  0x7a   : > { %p1625_p1 = por %p1624_p12, %p1623_p9 }
  0x7b   : > { %p1621_p8 = pneg %p1620_p10 }
  0x7c   : > { %p1627_p13 = por %p1626_p6, %p1625_p1 }
  0x7e   : > { %p1628_p11 = pnand %p1627_p13, %p1621_p8 }
  0x80   : > { %1631 = shalt.err (!%p1628_p11)
}
  0x81   : > { %s1632_s13 = scalar_lea.vmem %s2031_s16, 128  ;;  %s1776_s10 = smov [#allocation8]  }
  0x82   : > { %p1633_p2 = scmp.ne.s32.totalorder %s2031_s16, %s1632_s13  ;;  %s1637_s28 = sshll.u32 %s1776_s10, 4  ;;  %s1638_s28 = int_to_ptr.vmem [resolvable:$false] %s1637_s28 }
  0x83   : > { %s1639_s0 = scalar_lea.vmem %s1638_s28, 256  ;;  %p1640_p3 = scmp.lt.s32.totalorder %s2031_s16, %s1638_s28 }
  0x84   : > { %p1635_p5 = pnand %p1633_p2, %p1917_p4  ;;  %p1641_p10 = scmp.lt.s32.totalorder %s1639_s0, %s1632_s13 }
  0x86   : > { %p1636_p7 = pneg %p1635_p5  ;;  %p1642_p9 = por %p1641_p10, %p1640_p3 }
  0x88   : > { %p1643_p12 = pnand %p1642_p9, %p1636_p7 }
  0x8a   : > { %1646 = shalt.err (!%p1643_p12)
}
  0x8b   : > { %s1777_s15 = smov 32   ;;  %s1778_s8 = smov 2  }
  0x8c   : > { %1444 = dma.hbm_to_vmem [thread:$0]  (!%p1895_p0), %s2027_s11, 128, %s2031_s16, %s290_s18, %s1777_s15, %s1777_s15, %s1778_s8  }
  0x8d   : > { %p2291_p4 = scmp.ne.s32.totalorder %s2287_s17, 0 }
  0x8e   : > { %s2060_s29 = sand.u32 (!%p2291_p4), 1, %s1753_s19   ;;  %p2292_p8 = scmp.ne.s32.totalorder (!%p2291_p4), %s2277_s30, 0 }
  0x8f   : > { %313 = sbr.rel (%p2291_p4) target bundleno = 924 (0x39c), region = 36  ;;  %s2063_s14 = sshll.u32 (!%p2291_p4), %s2060_s29, 5 }
  0x90   : > { %s316_s26 = scalar_lea.sflag (!%p2291_p4), [#allocation3], %s2060_s29  ;;  %s2067_s1 = scalar_lea.vmem (!%p2291_p4), [#allocation2], %s2063_s14 }
  0x96   : > { %1728 = dma.done.wait (%p2292_p8), %s316_s26, 512  }
  0x97   : > { %1730 = vsyncadd (%p2292_p8), %s316_s26, 4294966784  ;;  %s324_s9 = sand.u32 1, %s1847_s24   ;;  %s328_s17 = scalar_lea.vmem [#allocation5], %s2063_s14 }
  0x98   : > { %s325_s12 = scalar_lea.sflag [#allocation6], %s324_s9 }
  0x99   : > { %1732 = dma.done.wait (%p2292_p8), %s325_s12, 1024  }
  0x9a   : > { %1734 = vsyncadd (%p2292_p8), %s325_s12, 4294966272  ;;  %s1335_s11 = sshll.u32 %s2060_s29, 3  ;;  %s2081_s16 = scalar_lea.vmem [#allocation7], %s2063_s14 }
  0x9b   : > { %s343_s18 = scalar_lea.sflag [#allocation9], %s2060_s29  ;;  %s2084_s27 = scalar_lea.vmem [#allocation8], %s1335_s11 }
  0x9c   : > { %1736 = dma.done.wait (%p2292_p8), %s343_s18, 128  }
  0x9d   : > { %1738 = vsyncadd (%p2292_p8), %s343_s18, 4294967168  ;;  %v1779_v0 = vmov 0.0   ;;  %vm1780_vm0 = vmmov 0   ;;  %vm417_vm1 = vcmask 261120   ;;  %v405_v1 = vld [vmem:[%s328_s17] sm:$0xff]  ;;  %v406_v3 = vld [vmem:[%s328_s17 + $0x8] sm:$0xff] }
  0x9e   : > { %1380 = vmatprep.subr.mxu0 %v1779_v0  ;;  %1382 = vmatprep.mubr.msk.f32.mxu0 %vm1780_vm0, %v1779_v0  ;;  %v401_v2 = vld [vmem:[%s2067_s1] sm:$0xff]  ;;  %v402_v5 = vld [vmem:[%s2067_s1 + $0x8] sm:$0xff]  ;;  %v403_v6 = vld [vmem:[%s2067_s1 + $0x10] sm:$0xff]  ;;  %v1781_v17 = vmov 0   ;;  %vm746_vm8 = vcmask 64512   ;;  %s392_s24 = scalar_lea.vmem [#allocation11], %s2063_s14 }
  0x9f   : > { %1385 = vmatprep.subr.mxu1 %v1779_v0  ;;  %1387 = vmatprep.mubr.msk.f32.mxu1 %vm1780_vm0, %v1779_v0  ;;  %v413_v4 = vmul.f32 0.17677669, %v401_v2  ;;  %v407_v7 = vld [vmem:[%s328_s17 + $0x10] sm:$0xff]  ;;  %v414_v8 = vmul.f32 0.17677669, %v402_v5  ;;  %v404_v9 = vld [vmem:[%s2067_s1 + $0x18] sm:$0xff] }
  0xa0   : > { %1381 = vmatpush3.xpose.msk.msra.mxu0 %vm417_vm1, %v405_v1  ;;  %1386 = vmatpush3.xpose.msk.msra.mxu1 %vm417_vm1, %v406_v3  ;;  %v408_v10 = vld [vmem:[%s328_s17 + $0x18] sm:$0xff]  ;;  %v415_v11 = vmul.f32 0.17677669, %v403_v6  ;;  %v416_v12 = vmul.f32 0.17677669, %v404_v9  ;;  %v409_v62 = vld [vmem:[%s2081_s16] sm:$0xff] }
  0xa1   : > { %1390 = vmatprep.subr.mxu0 %v1779_v0  ;;  %1395 = vmatprep.subr.mxu1 %v1779_v0  ;;  %v722_v13 = vld [vmem:[%s2084_s27] sm:$0x3]  ;;  %v723_v14 = vld [vmem:[%s2084_s27 + $0x2] sm:$0x3]  ;;  %v724_v15 = vld [vmem:[%s2084_s27 + $0x4] sm:$0x3] }
  0xa2   : > { %vm726_vm2 = vnez %v722_v13  ;;  %vm727_vm3 = vnez %v723_v14  ;;  %v725_v16 = vld [vmem:[%s2084_s27 + $0x6] sm:$0x3]  ;;  %vm728_vm4 = vnez %v724_v15  ;;  %s1362_s30 = sshll.u32 %s1761_s21, 9  ;;  %s1128_s25 = sshll.u32 %s392_s24, 4  ;;  %s2159_s25 = int_to_ptr.vmem [resolvable:$true] %s1128_s25 }
  0xa3   : > { %1383 = vmatmul.mubr.msk.f32.vlgmr.msra.gmra.mrb[0].mxu0 %vm417_vm1, %v413_v4  ;;  %1388 = vmatmul.mubr.msk.f32.vlgmr.msra.gmra.mrb[0].mxu1 %vm417_vm1, %v414_v8  ;;  %v730_v18 = vsel %vm726_vm2, 16843009, %v1781_v17  ;;  %v731_v19 = vsel %vm727_vm3, 16843009, %v1781_v17  ;;  %vm729_vm5 = vnez %v725_v16  ;;  %v732_v22 = vsel %vm728_vm4, 16843009, %v1781_v17  ;;  %s2157_s23 = scalar_lea.hbm %s2257_s5, %s1362_s30 }
  0xa4   : > { %1391 = vmatpush3.xpose.msk.msra.mxu0 %vm417_vm1, %v407_v7  ;;  %1392 = vmatprep.mubr.msk.f32.mxu0 %vm1780_vm0, %v1779_v0  ;;  %v734_v20 = vunpack.c.0.s8 %v730_v18  ;;  %v735_v21 = vunpack.c.0.s8 %v731_v19  ;;  %v733_v23 = vsel %vm729_vm5, 16843009, %v1781_v17  ;;  %v736_v24 = vunpack.c.0.s8 %v732_v22  ;;  %v410_v63 = vld [vmem:[%s2081_s16 + $0x8] sm:$0xff]  ;;  %v411_v7 = vld [vmem:[%s2081_s16 + $0x10] sm:$0xff]  ;;  %s1097_s13 = scalar_lea.sflag [#allocation12], %s2060_s29  ;;  %s1647_s10 = scalar_lea.vmem %s2159_s25, 512 }
  0xa5   : > { %1396 = vmatpush3.xpose.msk.msra.mxu1 %vm417_vm1, %v408_v10  ;;  %1397 = vmatprep.mubr.msk.f32.mxu1 %vm1780_vm0, %v1779_v0  ;;  %v737_v25 = vunpack.c.0.s8 %v733_v23  ;;  %p1648_p0 = scmp.ne.s32.totalorder %s2159_s25, %s1647_s10  ;;  %p2293_p1 = scmp.ne.s32.totalorder %s2278_s6, 0 }
  0xa6   : > { %1400 = vmatprep.subr.mxu0 %v1779_v0  ;;  %1405 = vmatprep.subr.mxu1 %v1779_v0  ;;  %vm738_vm6 = vcmp.ne.s32.totalorder %v734_v20, 0  ;;  %vm739_vm7 = vcmp.ne.s32.totalorder %v735_v21, 0  ;;  %vm740_vm9 = vcmp.ne.s32.totalorder %v736_v24, 0  ;;  %s1782_s28 = smov [#allocation11]  }
  0xa7   : > { %1393 = vmatmul.mubr.msk.f32.vlgmr.msra.gmra.mrb[2].mxu0 %vm417_vm1, %v415_v11  ;;  %vm741_vm10 = vcmp.ne.s32.totalorder %v737_v25, 0  ;;  %v412_v11 = vld [vmem:[%s2081_s16 + $0x18] sm:$0xff]  ;;  %p1649_p6 = pnand %p1648_p0, %p2293_p1  ;;  %s1651_s0 = sshll.u32 %s1782_s28, 4  ;;  %s1652_s0 = int_to_ptr.vmem [resolvable:$false] %s1651_s0 }
  0xa8   : > { %1398 = vmatmul.mubr.msk.f32.vlgmr.msra.gmra.mrb[2].mxu1 %vm417_vm1, %v416_v12  ;;  %1402 = vmatprep.mubr.msk.f32.mxu0 %vm1780_vm0, %v1779_v0  ;;  %s1653_s15 = scalar_lea.vmem %s1652_s0, 1024  ;;  %p1654_p11 = scmp.lt.s32.totalorder %s2159_s25, %s1652_s0 }
  0xa9   : > { %1407 = vmatprep.mubr.msk.f32.mxu1 %vm1780_vm0, %v1779_v0  ;;  %1401 = vmatpush3.msra.mxu0 %v409_v62  ;;  %p1650_p13 = pneg %p1649_p6  ;;  %p1655_p2 = scmp.lt.s32.totalorder %s1653_s15, %s1647_s10 }
  0xaa   : > { %1410 = vmatprep.subr.mxu0 %v1779_v0  ;;  %1406 = vmatpush3.msra.mxu1 %v410_v63 }
  0xab   : > { %1415 = vmatprep.subr.mxu1 %v1779_v0  ;;  %p1656_p5 = por %p1655_p2, %p1654_p11 }
  0xad   : > { %p1657_p7 = pnand %p1656_p5, %p1650_p13 }
 0x176   : > { %v490_v26 = vpop.f32.mrb[0].mxu0  ;;  %v566_v27 = vpop.f32.mrb[0].mxu1 }
 0x177   : > { %v742_v28 = vsel %vm738_vm6, -1e+09, %v490_v26  ;;  %v1384_v29 = vpop.f32.mrb[1].mxu0  ;;  %v743_v30 = vsel %vm739_vm7, -1e+09, %v566_v27  ;;  %v1389_v31 = vpop.f32.mrb[1].mxu1 }
 0x178   : > { %v747_v32 = vsel %vm746_vm8, %v742_v28, -inf  ;;  %v750_v34 = vsel %vm746_vm8, %v743_v30, -inf }
 0x179   : > { %748 = vmax.xlane.f32.xlu0 %v747_v32 }
 0x17a   : > { %v642_v33 = vpop.f32.mrb[2].mxu0 }
 0x17b   : > { %v744_v35 = vsel %vm740_vm9, -1e+09, %v642_v33  ;;  %v1394_v36 = vpop.f32.mrb[3].mxu0  ;;  %v718_v37 = vpop.f32.mrb[2].mxu1 }
 0x17c   : > { %v753_v38 = vsel %vm746_vm8, %v744_v35, -inf  ;;  %v745_v39 = vsel %vm741_vm10, -1e+09, %v718_v37  ;;  %v1399_v40 = vpop.f32.mrb[3].mxu1 }
 0x17d   : > { %751 = vmax.xlane.f32.xlu0 %v750_v34  ;;  %754 = vmax.xlane.f32.xlu1 %v753_v38  ;;  %v756_v41 = vsel %vm746_vm8, %v745_v39, -inf }
 0x181   : > { %757 = vmax.xlane.f32.xlu1 %v756_v41 }
 0x206   : > { %v749_v42 = vpop.xlane.xlu0 %748 }
 0x207   : > { %v759_v43 = vsub.f32 %v742_v28, %v749_v42 }
 0x209   : > { %v763_v44 = vmul.f32 1.442695, %v759_v43 }
 0x20a   : > { %v752_v45 = vpop.xlane.xlu0 %751  ;;  %v755_v46 = vpop.xlane.xlu1 %754 }
 0x20b   : > { %1511 = vpow2.f32 %v763_v44  ;;  %v760_v47 = vsub.f32 %v743_v30, %v752_v45  ;;  %v761_v48 = vsub.f32 %v744_v35, %v755_v46 }
 0x20d   : > { %v765_v49 = vmul.f32 1.442695, %v760_v47  ;;  %v767_v50 = vmul.f32 1.442695, %v761_v48 }
 0x20e   : > { %v758_v51 = vpop.xlane.xlu1 %757 }
 0x20f   : > { %1513 = vpow2.f32 %v765_v49  ;;  %v762_v52 = vsub.f32 %v745_v39, %v758_v51 }
 0x210   : > { %1515 = vpow2.f32 %v767_v50 }
 0x211   : > { %v769_v53 = vmul.f32 1.442695, %v762_v52 }
 0x213   : > { %1517 = vpow2.f32 %v769_v53 }
 0x215   : > { %v1512_v54 = vpop.eup %1511 }
 0x216   : > { %v771_v55 = vsel %vm746_vm8, %v1512_v54, 0.0 }
 0x217   : > { %772 = vadd.xlane.f32.xlu0 %v771_v55 }
 0x219   : > { %v1514_v56 = vpop.eup %1513 }
 0x21a   : > { %v1516_v57 = vpop.eup %1515  ;;  %v774_v58 = vsel %vm746_vm8, %v1514_v56, 0.0 }
 0x21b   : > { %775 = vadd.xlane.f32.xlu1 %v774_v58  ;;  %v777_v59 = vsel %vm746_vm8, %v1516_v57, 0.0 }
 0x21c   : > { %778 = vadd.xlane.f32.xlu0 %v777_v59 }
 0x21d   : > { %v1518_v60 = vpop.eup %1517 }
 0x21e   : > { %v780_v61 = vsel %vm746_vm8, %v1518_v60, 0.0 }
 0x21f   : > { %781 = vadd.xlane.f32.xlu1 %v780_v61 }
 0x2a4   : > { %v773_v1 = vpop.xlane.xlu0 %772 }
 0x2a5   : > { %1519 = vrcp.f32 %v773_v1 }
 0x2a8   : > { %v776_v2 = vpop.xlane.xlu1 %775 }
 0x2a9   : > { %v779_v3 = vpop.xlane.xlu0 %778  ;;  %1521 = vrcp.f32 %v776_v2 }
 0x2aa   : > { %1523 = vrcp.f32 %v779_v3 }
 0x2ac   : > { %v782_v4 = vpop.xlane.xlu1 %781 }
 0x2ad   : > { %1525 = vrcp.f32 %v782_v4 }
 0x2af   : > { %v1520_v5 = vpop.eup %1519 }
 0x2b0   : > { %v787_v6 = vmul.f32 %v1520_v5, %v1512_v54 }
 0x2b2   : > { %1087 = vst.msk [vmem:[%s392_s24] sm:$0xff] %vm746_vm8, %v787_v6  ;;  %1403 = vmatmul.mubr.msk.f32.vlgmr.msra.gmra.mrb[4].mxu0 %vm746_vm8, %v787_v6 }
 0x2b3   : > { %v1522_v8 = vpop.eup %1521  ;;  %1411 = vmatpush3.msra.mxu0 %v411_v7  ;;  %1412 = vmatprep.mubr.msk.f32.mxu0 %vm1780_vm0, %v1779_v0 }
 0x2b4   : > { %v1524_v9 = vpop.eup %1523  ;;  %v788_v10 = vmul.f32 %v1522_v8, %v1514_v56 }
 0x2b5   : > { %v789_v12 = vmul.f32 %v1524_v9, %v1516_v57 }
 0x2b6   : > { %1088 = vst.msk [vmem:[%s392_s24 + $0x8] sm:$0xff] %vm746_vm8, %v788_v10  ;;  %1408 = vmatmul.mubr.msk.f32.vlgmr.msra.gmra.mrb[4].mxu1 %vm746_vm8, %v788_v10 }
 0x2b7   : > { %v1526_v13 = vpop.eup %1525  ;;  %1089 = vst.msk [vmem:[%s392_s24 + $0x10] sm:$0xff] %vm746_vm8, %v789_v12  ;;  %1413 = vmatmul.mubr.msk.f32.vlgmr.msra.gmra.mrb[6].mxu0 %vm746_vm8, %v789_v12  ;;  %1416 = vmatpush3.msra.mxu1 %v412_v11 }
 0x2b8   : > { %v790_v14 = vmul.f32 %v1526_v13, %v1518_v60  ;;  %1417 = vmatprep.mubr.msk.f32.mxu1 %vm1780_vm0, %v1779_v0 }
 0x2ba   : > { %1090 = vst.msk [vmem:[%s392_s24 + $0x18] sm:$0xff] %vm746_vm8, %v790_v14  ;;  %1418 = vmatmul.mubr.msk.f32.vlgmr.msra.gmra.mrb[6].mxu1 %vm746_vm8, %v790_v14 }
 0x2bb   : > { %1660 = shalt.err (!%p1657_p7)
}
 0x2bc   : > { %s1661_s8 = scalar_lea.hbm %s2157_s23, 512  ;;  %s1665_s9 = scalar_lea.hbm %s2257_s5, 1024 }
 0x2bd   : > { %p1662_p3 = scmp.ne.s32.totalorder %s2157_s23, %s1661_s8  ;;  %p1666_p12 = scmp.lt.u32.totalorder %s2157_s23, %s2257_s5 }
 0x2be   : > { %p1667_p4 = scmp.lt.u32.totalorder %s1665_s9, %s1661_s8  ;;  %p1669_p0 = scmp.lt.u32.totalorder %s1661_s8, %s2157_s23 }
 0x2bf   : > { %p1663_p10 = pnand %p1662_p3, %p2293_p1 }
 0x2c0   : > { %p1668_p8 = por %p1667_p4, %p1666_p12 }
 0x2c1   : > { %p1664_p9 = pneg %p1663_p10 }
 0x2c2   : > { %p1670_p6 = por %p1669_p0, %p1668_p8 }
 0x2c4   : > { %p1671_p13 = pnand %p1670_p6, %p1664_p9 }
 0x2c6   : > { %1674 = shalt.err (!%p1671_p13)
}
 0x2c7   : > { %s1783_s11 = smov 128   ;;  %s1784_s16 = smov 8  }
 0x2c8   : > { %1429 = dma.vmem_to_hbm [thread:$0]  (%p2293_p1), %s2159_s25, 512, %s2157_s23, %s1097_s13, %s1783_s11, %s1783_s11, %s1784_s16  }
 0x2c9   : > { %s385_s18 = scalar_lea.vmem [#allocation10], %s2063_s14  ;;  %s2199_s7 = scalar_lea.hbm %s2256_s4, %s1362_s30 }
 0x2ca   : > { %s1111_s27 = sshll.u32 %s385_s18, 4  ;;  %s1092_s20 = scalar_lea.sflag [#allocation4], %s2060_s29  ;;  %s2191_s27 = int_to_ptr.vmem [resolvable:$true] %s1111_s27 }
 0x2cb   : > { %s1675_s23 = scalar_lea.vmem %s2191_s27, 512  ;;  %s1785_s25 = smov [#allocation10]  }
 0x2cc   : > { %p1676_p11 = scmp.ne.s32.totalorder %s2191_s27, %s1675_s23  ;;  %s1679_s13 = sshll.u32 %s1785_s25, 4  ;;  %s1680_s13 = int_to_ptr.vmem [resolvable:$false] %s1679_s13 }
 0x2cd   : > { %s1681_s10 = scalar_lea.vmem %s1680_s13, 1024  ;;  %p1682_p7 = scmp.lt.s32.totalorder %s2191_s27, %s1680_s13 }
 0x2ce   : > { %p1677_p2 = pnand %p1676_p11, %p2293_p1  ;;  %p1683_p3 = scmp.lt.s32.totalorder %s1681_s10, %s1675_s23 }
 0x2d0   : > { %p1678_p5 = pneg %p1677_p2  ;;  %p1684_p10 = por %p1683_p3, %p1682_p7 }
 0x2d2   : > { %p1685_p9 = pnand %p1684_p10, %p1678_p5 }
 0x385   : > { %v860_v0 = vpop.f32.mrb[4].mxu0 }
 0x386   : > { %1083 = vst.msk [vmem:[%s385_s18] sm:$0xff] %vm417_vm1, %v860_v0  ;;  %v1404_v15 = vpop.f32.mrb[5].mxu0 }
 0x389   : > { %v933_v16 = vpop.f32.mrb[4].mxu1 }
 0x38a   : > { %1084 = vst.msk [vmem:[%s385_s18 + $0x8] sm:$0xff] %vm417_vm1, %v933_v16  ;;  %v1006_v17 = vpop.f32.mrb[6].mxu0  ;;  %v1409_v18 = vpop.f32.mrb[5].mxu1 }
 0x38b   : > { %1085 = vst.msk [vmem:[%s385_s18 + $0x10] sm:$0xff] %vm417_vm1, %v1006_v17  ;;  %v1414_v19 = vpop.f32.mrb[7].mxu0 }
 0x38d   : > { %v1079_v20 = vpop.f32.mrb[6].mxu1 }
 0x38e   : > { %1086 = vst.msk [vmem:[%s385_s18 + $0x18] sm:$0xff] %vm417_vm1, %v1079_v20  ;;  %v1419_v21 = vpop.f32.mrb[7].mxu1 }
 0x38f   : > { %1688 = shalt.err (!%p1685_p9)
}
 0x390   : > { %s1689_s21 = scalar_lea.hbm %s2199_s7, 512  ;;  %s1693_s0 = scalar_lea.hbm %s2256_s4, 1024 }
 0x391   : > { %p1690_p12 = scmp.ne.s32.totalorder %s2199_s7, %s1689_s21  ;;  %p1694_p0 = scmp.lt.u32.totalorder %s2199_s7, %s2256_s4 }
 0x392   : > { %p1695_p6 = scmp.lt.u32.totalorder %s1693_s0, %s1689_s21  ;;  %p1697_p11 = scmp.lt.u32.totalorder %s1689_s21, %s2199_s7 }
 0x393   : > { %p1691_p4 = pnand %p1690_p12, %p2293_p1 }
 0x394   : > { %p1696_p13 = por %p1695_p6, %p1694_p0 }
 0x395   : > { %p1692_p8 = pneg %p1691_p4 }
 0x396   : > { %p1698_p2 = por %p1697_p11, %p1696_p13 }
 0x398   : > { %p1699_p5 = pnand %p1698_p2, %p1692_p8 }
 0x39a   : > { %1702 = shalt.err (!%p1699_p5)
}
 0x39b   : > { %1428 = dma.vmem_to_hbm [thread:$0]  (%p2293_p1), %s2191_s27, 512, %s2199_s7, %s1092_s20, %s1783_s11, %s1783_s11, %s1784_s16  }
 0x39c PF: > { %s2294_s26 = sld [smem:[#allocation18_spill]]  ;;  %s2295_s1 = sld [smem:[#allocation23_spill]] }
 0x39d   : > { %s2296_s9 = sld [smem:[#allocation20_spill]] }
 0x3a2   : > { %s1143_s12 = sand.u32 1, %s2294_s26   ;;  %p2297_p7 = scmp.ne.s32.totalorder %s2295_s1, 0 }
 0x3a3   : > { %p2298_p3 = scmp.ge.s32.totalorder %s2296_s9, 2  ;;  %s1144_s17 = scalar_lea.sflag [#allocation4], %s1143_s12 }
 0x3a5   : > { %p1446_p10 = pnand %p2298_p3, %p2297_p7 }
 0x3a7   : > { %1740 = dma.done.wait (!%p1446_p10), %s1144_s17, 512  }
 0x3a8   : > { %1742 = vsyncadd (!%p1446_p10), %s1144_s17, 4294966784  ;;  %s1153_s6 = scalar_lea.sflag [#allocation12], %s1143_s12 }
 0x3a9   : > { %1744 = dma.done.wait (!%p1446_p10), %s1153_s6, 512  }
 0x3aa   : > { %1746 = vsyncadd (!%p1446_p10), %s1153_s6, 4294966784  ;;  %s31_s23 = sadd.s32 1, %s2296_s9   ;;  %s2299_s29 = sld [smem:[#allocation19_spill]] }
 0x3ab   : > { %p28_p9 = scmp.ge.s32.totalorder %s31_s23, 4   ;;  %s2300_s20 = sld [smem:[#allocation22_spill]] }
 0x3ac   : > { %s2301_s11 = sld [smem:[#allocation21_spill]]  ;;  %s2302_s18 = smov %s1753_s19 }
 0x3ad   : > { %s2304_s21 = smov %s1765_s22  ;;  %30 = sbr.rel (!%p28_p9) target bundleno = 15 (0xf), region = 135 }
 0x3b0   : > { %s2303_s19 = smov %s2299_s29 }
 0x3b2   : > { %s2305_s22 = smov %s2301_s11 }
 0x3b4   :  { %1158 = vsyncpa [#allocation3], 1 }
 0x3b5   :  { %1160 = vsyncpa [#allocation3 + $0x1], 1 }
 0x3b6   :  { %1161 = vsyncpa [#allocation6], 1 }
 0x3b7   :  { %1163 = vsyncpa [#allocation6 + $0x1], 1 }
 0x3b8   :  { %1164 = vsyncpa [#allocation9], 1 }
 0x3b9   :  { %1166 = vsyncpa [#allocation9 + $0x1], 1 }
 0x3ba   :  { %1167 = vsyncpa [#allocation4], 1 }
 0x3bb   :  { %1169 = vsyncpa [#allocation4 + $0x1], 1 }
 0x3bc   :  { %1170 = vsyncpa [#allocation12], 1 }
 0x3bd   :  { %1172 = vsyncpa [#allocation12 + $0x1], 1 }

</bundles_post_ra>
